<compile_context>
chip_gen: v6e
topology: v6e:2x2x1
jax: 0.10.0
libtpu: 0.0.40
codegen_flags: <defaults>
</compile_context>

<pallas_src>
import jax
import jax.numpy as jnp
from jax.experimental import pallas as pl
from jax.experimental.pallas import tpu as pltpu


# ----------------------------------------------------------------------------
# Preferred kernel-boundary path: aliased output, zero-copy no-op body.
# ----------------------------------------------------------------------------
def _identity_alias_kernel(x_hbm_ref, o_hbm_ref):
    # The output HBM buffer is aliased to the input buffer, so the data is
    # already in place.  touch() only pins an ordering dependency so the
    # aliased output counts as produced by this kernel; nothing is moved.
    del x_hbm_ref
    pltpu.touch(o_hbm_ref)


def _identity_aliased(x):
    return pl.pallas_call(
        _identity_alias_kernel,
        out_shape=jax.ShapeDtypeStruct(x.shape, x.dtype),
        in_specs=[pl.BlockSpec(memory_space=pl.ANY)],   # stay in HBM, no tiling
        out_specs=pl.BlockSpec(memory_space=pl.ANY),
        input_output_aliases={0: 0},                    # out buffer == in buffer
        cost_estimate=pl.CostEstimate(
            flops=0, transcendentals=0, bytes_accessed=0),
    )(x)


# ----------------------------------------------------------------------------
# Fallback kernel-boundary path: one whole-array HBM -> HBM DMA.
# No VMEM, no grid, no per-generation tile tuning; already at the copy floor.
# ----------------------------------------------------------------------------
def _identity_dma_kernel(x_hbm_ref, o_hbm_ref, copy_sem):
    copy = pltpu.make_async_copy(x_hbm_ref, o_hbm_ref, copy_sem)
    copy.start()
    copy.wait()


def _identity_copy(x):
    return pl.pallas_call(
        _identity_dma_kernel,
        out_shape=jax.ShapeDtypeStruct(x.shape, x.dtype),
        in_specs=[pl.BlockSpec(memory_space=pl.ANY)],
        out_specs=pl.BlockSpec(memory_space=pl.ANY),
        scratch_shapes=[pltpu.SemaphoreType.DMA(())],
        cost_estimate=pl.CostEstimate(
            flops=0, transcendentals=0,
            bytes_accessed=2 * x.size * x.dtype.itemsize),
    )(x)


def identical_forward(x, *, force_kernel=False):
    """Pallas implementation of Identical.forward(x) -> x.

    Default: return x unchanged (the true zero-cost identity; no pallas_call,
    no HBM traffic).  force_kernel=True: emit an explicit kernel boundary
    whose output aliases the input buffer, keeping HBM traffic ~0.
    """
    if not force_kernel:
        return x
    try:
        # Block here so any lowering/runtime rejection of the aliased no-op
        # path is caught and routed to the proven DMA fallback.
        return jax.block_until_ready(_identity_aliased(x))
    except Exception:
        # TODO(synk): drop this fallback once aliased no-op kernels are
        # guaranteed to lower on all deployed jax/libtpu versions.
        return _identity_copy(x)


if __name__ == "__main__":
    key = jax.random.PRNGKey(0)
    # Small NCHW input consistent with a conv-style retrieval model.
    x = jax.random.normal(key, (2, 4, 16, 16), dtype=jnp.float32)
    # Reference values captured independently of any buffer aliasing/donation.
    x_host = jax.device_get(x)

    # Zero-cost path (what a real model should use).
    y0 = jax.block_until_ready(identical_forward(x))

    # Explicit Pallas kernel-boundary path (aliased no-op; DMA copy fallback).
    y1 = jax.block_until_ready(identical_forward(x, force_kernel=True))

    x_ref = jnp.asarray(x_host)
    assert y0.shape == x.shape and y0.dtype == x.dtype
    assert y1.shape == x.shape and y1.dtype == x.dtype
    assert bool(jnp.all(y0 == x_ref))
    assert bool(jnp.all(y1 == x_ref))
    print("KERNEL_OK")
</pallas_src>

<mosaic_0001>
module attributes {stable_mosaic.version = 11 : i64} {
  func.func @_identity_alias_kernel(%arg0: memref<2x4x16x16xf32, #tpu.memory_space<any>>, %arg1: memref<2x4x16x16xf32, #tpu.memory_space<any>>) attributes {dimension_semantics = [], scalar_prefetch = 0 : i64, scratch_operands = 0 : i64, tpu.core_type = #tpu.core_type<tc>} {
    return
  }
}

module attributes {stable_mosaic.version = 11 : i64} {
  func.func @_identity_dma_kernel(%arg0: memref<2x4x16x16xf32, #tpu.memory_space<any>>, %arg1: memref<2x4x16x16xf32, #tpu.memory_space<any>>, %arg2: memref<!tpu.dma_semaphore, #tpu.memory_space<semaphore_mem>>) attributes {dimension_semantics = [], scalar_prefetch = 0 : i64, scratch_operands = 1 : i64, tpu.core_type = #tpu.core_type<tc>} {
    tpu.enqueue_dma source(%arg0 : memref<2x4x16x16xf32, #tpu.memory_space<any>>) target(%arg1 : memref<2x4x16x16xf32, #tpu.memory_space<any>>) target_semaphore(%arg2 : memref<!tpu.dma_semaphore, #tpu.memory_space<semaphore_mem>>)
    tpu.wait_dma2 semaphore(%arg2 : memref<!tpu.dma_semaphore, #tpu.memory_space<semaphore_mem>>) src(%arg0 : memref<2x4x16x16xf32, #tpu.memory_space<any>>) dst(%arg1 : memref<2x4x16x16xf32, #tpu.memory_space<any>>)
    return
  }
}

</mosaic_0001>

<bundles_post_ra>
// kernel: tpu_custom_call.1
= control target key start
LH: loop header
LB: loop body
LE: loop exit
PB: predicated region body
PF: predicated region fallthrough
CT: control target
= control target key end

     0   :  { %s16_s0 = inlined_call_operand.hbm [shape: f32[2,4,16,16], index: 0, kind: input, shape index: {}, may-alias: {0,1}]   ;;  %s17_s1 = inlined_call_operand.hbm [shape: f32[2,4,16,16], index: 1, kind: output, shape index: {}, may-alias: {0,1}]  }

// kernel: tpu_custom_call.1
= control target key start
LH: loop header
LB: loop body
LE: loop exit
PB: predicated region body
PF: predicated region fallthrough
CT: control target
= control target key end

     0   :  { %s30_s6 = smov [#allocation2]   ;;  %s31_s7 = smov 131072   ;;  %s49_s0 = inlined_call_operand.hbm [shape: f32[2,4,16,16], index: 0, kind: input, shape index: {}]   ;;  %s50_s1 = inlined_call_operand.hbm [shape: f32[2,4,16,16], index: 1, kind: output, shape index: {}]  }
   0x1   :  { %s32_s8 = smov 0  }
   0x2   :  { %12 = dma.general %s49_s0, 2048, %s50_s1, %s30_s6, %s31_s7, [#allocation4], %s32_s8, 0  }
   0x3   :  { %28 = dma.done.wait [#allocation2], 2048 }
   0x4   :  { %29 = vsyncadd [#allocation2], 4294965248 }
   0x5   :  { %18 = vsyncmov [#allocation2] }
   0x8   :  { %s19_s13 = vpop.sfrf %18 }
   0x9   :  { %p24_p0 = scmp.ne.s32.totalorder %s19_s13, 0 }
   0xb   :  { %23 = shalt.err (%p24_p0)  }

</bundles_post_ra>
